<compile_context>
chip_gen: v7x
topology: tpu7x:2x2x1
jax: 0.10.0
libtpu: 0.0.40
codegen_flags: <defaults>
</compile_context>

<pallas_src>
import functools

import numpy as np
import jax
import jax.numpy as jnp
from jax.experimental import pallas as pl
from jax.experimental.pallas import tpu as pltpu


# ----------------------------- Pallas kernel --------------------------------

def _basic_block_kernel(x_ref, w1_ref, w2_ref, b1_ref, b2_ref, mask_ref,
                        out_ref, *, width, last_relu, compute_dtype,
                        single_dot):
    """Fused conv3x3+bn1+relu -> conv3x3+bn2 (+residual, +relu).

    x_ref:    (nb, C, HW) f32 input block; channels on sublanes, pixels on lanes
    w*_ref:   (C, 9*C) if single_dot else (9, C, C); BN scale already folded in
    b*_ref:   (C, 1)   folded BatchNorm biases (f32)
    mask_ref: (9, HW)  0/1 per-tap validity masks (in the MXU dtype)
    out_ref:  (nb, C, HW)
    """
    nb, c, hw = x_ref.shape
    cdt = compute_dtype

    # ---- hoisted once per kernel: shared by both convs and every image -----
    # Static lane-rotation amount per tap: rolled[p] = a[(p + dy*W + dx) % HW].
    shifts = [((hw - ((t // 3 - 1) * width + (t % 3 - 1))) % hw)
              for t in range(9)]
    # Boundary masks broadcast to (C, HW) exactly once (no re-broadcast inside
    # the tap loops); values are 0/1 so the cdt representation is exact.
    masks = [None if t == 4 else
             jnp.broadcast_to(mask_ref[t:t + 1, :], (c, hw))
             for t in range(9)]
    b1 = jnp.broadcast_to(b1_ref[...], (c, hw))          # folded-BN biases, f32
    b2 = jnp.broadcast_to(b2_ref[...], (c, hw))

    def conv3x3(a, w):
        # a: (C, HW) in MXU dtype; w: BN-scale-folded weights.
        taps = []
        for t in range(9):
            if t == 4:                       # centre tap: no shift, no mask
                taps.append(a)
            else:                            # XLU roll + mask of wrapped lanes
                taps.append(pltpu.roll(a, shift=shifts[t], axis=1) * masks[t])
        if single_dot:
            # One big-K MXU matmul over the stacked taps (K = 9*C).
            return jnp.dot(w[...], jnp.concatenate(taps, axis=0),
                           preferred_element_type=jnp.float32)
        # Per-tap accumulation: no 9x im2col intermediate in VMEM.
        acc = jnp.dot(w[0], taps[0], preferred_element_type=jnp.float32)
        for t in range(1, 9):
            acc = acc + jnp.dot(w[t], taps[t],
                                preferred_element_type=jnp.float32)
        return acc

    for i in range(nb):                      # static unroll over the batch block
        x = x_ref[i]                         # (C, HW) f32 — also the residual
        xc = x.astype(cdt)
        # conv1 + bn1 + relu  (intermediate never leaves VMEM, f32 accumulate)
        mid = jnp.maximum(conv3x3(xc, w1_ref) + b1, 0.0)
        # conv2 + bn2 + residual (+ relu); residual stays f32
        y = conv3x3(mid.astype(cdt), w2_ref) + b2 + x
        if last_relu:
            y = jnp.maximum(y, 0.0)
        out_ref[i] = y.astype(out_ref.dtype)


# ------------------------------ JAX wrappers ---------------------------------

def _fold_bn(gamma, beta, mean, var, eps=1e-5):
    gamma = jnp.asarray(gamma, jnp.float32)
    beta = jnp.asarray(beta, jnp.float32)
    mean = jnp.asarray(mean, jnp.float32)
    var = jnp.asarray(var, jnp.float32)
    scale = gamma / jnp.sqrt(var + eps)
    bias = beta - mean * scale
    return scale, bias.reshape(-1, 1)


def _pack_conv_w(w, bn_scale, single_dot):
    # torch layout (Cout, Cin, 3, 3); BN scale folded per output channel in f32.
    w = jnp.asarray(w, jnp.float32) * bn_scale[:, None, None, None]
    cout, cin = w.shape[0], w.shape[1]
    if single_dot:
        # (Cout, 9*Cin) with column index (ky*3+kx)*Cin + ci (tap-major im2col)
        return jnp.transpose(w, (0, 2, 3, 1)).reshape(cout, 9 * cin)
    # (9, Cout, Cin): one (Cout, Cin) slab per tap
    return jnp.transpose(w, (2, 3, 0, 1)).reshape(9, cout, cin)


def _tap_masks(h, w):
    # 0/1 validity masks for each of the 9 taps (zero padding of the 3x3 conv).
    ys = np.arange(h)[:, None]
    xs = np.arange(w)[None, :]
    masks = []
    for ky in range(3):
        for kx in range(3):
            dy, dx = ky - 1, kx - 1
            valid = ((ys + dy >= 0) & (ys + dy < h) &
                     (xs + dx >= 0) & (xs + dx < w))
            masks.append(valid.reshape(-1))
    return np.stack(masks, axis=0).astype(np.float32)             # (9, h*w)


def basic_block_forward(x_nchw, params, *, last_relu=True,
                        compute_dtype=jnp.float32, images_per_step=None,
                        single_dot=None):
    """BasicBlock.forward for stride=1, downsample=None, first_downsample=None.

    x_nchw: (N, C, H, W); returns (N, C, H, W) in x's dtype.
    compute_dtype: MXU-input dtype (f32 / bf16); accumulation, the residual
    and the bias/ReLU epilogue are always f32.
    """
    # TODO(synk): stride>1 / downsample(pool + optional 1x1 conv) /
    # first_downsample (AvgPool2d) branches are not exercised by this config
    # and not implemented.
    n, c, h, w = x_nchw.shape
    hw = h * w
    if images_per_step is None:
        images_per_step = n     # tiny shapes: one grid step, no per-step overhead
    nb = images_per_step
    assert n % nb == 0
    if single_dot is None:
        single_dot = c < 128    # big-K im2col only while the 9x blowup is cheap

    # Residual path stays f32; bf16 only feeds the MXU inside the kernel.
    x_flat = x_nchw.reshape(n, c, hw).astype(jnp.float32)

    s1, b1 = _fold_bn(params["bn1_gamma"], params["bn1_beta"],
                      params["bn1_mean"], params["bn1_var"])
    s2, b2 = _fold_bn(params["bn2_gamma"], params["bn2_beta"],
                      params["bn2_mean"], params["bn2_var"])
    w1 = _pack_conv_w(params["conv1_w"], s1, single_dot).astype(compute_dtype)
    w2 = _pack_conv_w(params["conv2_w"], s2, single_dot).astype(compute_dtype)
    masks = jnp.asarray(_tap_masks(h, w)).astype(compute_dtype)

    if single_dot:
        w_spec = pl.BlockSpec((c, 9 * c), lambda i: (0, 0))
    else:
        w_spec = pl.BlockSpec((9, c, c), lambda i: (0, 0, 0))

    kernel = functools.partial(
        _basic_block_kernel, width=w, last_relu=last_relu,
        compute_dtype=compute_dtype, single_dot=single_dot)

    # TODO(synk): for real ResNet shapes add an H-tile "parallel" grid axis
    # (rows_per_tile*W a multiple of 128, 1-row halo) so both v7x TensorCores
    # stay busy, and budget vmem_limit_bytes for the resident weights.
    out_flat = pl.pallas_call(
        kernel,
        out_shape=jax.ShapeDtypeStruct((n, c, hw), x_nchw.dtype),
        grid_spec=pltpu.PrefetchScalarGridSpec(
            num_scalar_prefetch=0,
            grid=(n // nb,),
            in_specs=[
                pl.BlockSpec((nb, c, hw), lambda i: (i, 0, 0)),   # x (f32)
                w_spec,                                           # w1 (scale-folded)
                w_spec,                                           # w2 (scale-folded)
                pl.BlockSpec((c, 1), lambda i: (0, 0)),           # bn1 bias
                pl.BlockSpec((c, 1), lambda i: (0, 0)),           # bn2 bias
                pl.BlockSpec((9, hw), lambda i: (0, 0)),          # tap masks
            ],
            out_specs=pl.BlockSpec((nb, c, hw), lambda i: (i, 0, 0)),
        ),
        compiler_params=pltpu.CompilerParams(
            dimension_semantics=("parallel",),
            vmem_limit_bytes=32 * 1024 * 1024),
    )(x_flat, w1, w2, b1, b2, masks)
    return out_flat.reshape(n, c, h, w)


# --------------------------- pure-JAX reference -------------------------------

def _ref_forward(x_nchw, params, *, last_relu=True, eps=1e-5):
    def conv(x, w):  # x: NCHW, w: (Cout,Cin,3,3)
        return jax.lax.conv_general_dilated(
            x, w, window_strides=(1, 1), padding=((1, 1), (1, 1)),
            dimension_numbers=("NCHW", "OIHW", "NCHW"))

    def bn(x, g, b, m, v):
        g = g[None, :, None, None]
        b = b[None, :, None, None]
        m = m[None, :, None, None]
        v = v[None, :, None, None]
        return (x - m) / jnp.sqrt(v + eps) * g + b

    residual = x_nchw
    out = conv(x_nchw, params["conv1_w"])
    out = bn(out, params["bn1_gamma"], params["bn1_beta"],
             params["bn1_mean"], params["bn1_var"])
    out = jnp.maximum(out, 0.0)
    out = conv(out, params["conv2_w"])
    out = bn(out, params["bn2_gamma"], params["bn2_beta"],
             params["bn2_mean"], params["bn2_var"])
    out = out + residual
    if last_relu:
        out = jnp.maximum(out, 0.0)
    return out


# ----------------------------------- main -------------------------------------

if __name__ == "__main__":
    key = jax.random.PRNGKey(0)
    N, C, H, W = 2, 4, 16, 16   # inplanes == planes == 4
    k = jax.random.split(key, 12)

    x = jax.random.normal(k[0], (N, C, H, W), jnp.float32)

    params = {
        "conv1_w": 0.1 * jax.random.normal(k[1], (C, C, 3, 3), jnp.float32),
        "conv2_w": 0.1 * jax.random.normal(k[2], (C, C, 3, 3), jnp.float32),
        "bn1_gamma": 1.0 + 0.1 * jax.random.normal(k[3], (C,), jnp.float32),
        "bn1_beta": 0.1 * jax.random.normal(k[4], (C,), jnp.float32),
        "bn1_mean": 0.1 * jax.random.normal(k[5], (C,), jnp.float32),
        "bn1_var": jax.random.uniform(k[6], (C,), jnp.float32, 0.5, 1.5),
        "bn2_gamma": 1.0 + 0.1 * jax.random.normal(k[7], (C,), jnp.float32),
        "bn2_beta": 0.1 * jax.random.normal(k[8], (C,), jnp.float32),
        "bn2_mean": 0.1 * jax.random.normal(k[9], (C,), jnp.float32),
        "bn2_var": jax.random.uniform(k[10], (C,), jnp.float32, 0.5, 1.5),
    }

    ref = _ref_forward(x, params, last_relu=True)

    # 1) Default path: whole batch in one grid step, single big-K dot, f32 MXU.
    out = jax.block_until_ready(basic_block_forward(x, params, last_relu=True))
    assert out.shape == (N, C, H, W)
    assert jnp.allclose(out, ref, atol=1e-4, rtol=1e-4), "f32 mismatch vs reference"

    # 2) bf16 MXU inputs / f32 accumulation + f32 residual (v6e / v7x fast path).
    out_bf16 = jax.block_until_ready(
        basic_block_forward(x, params, last_relu=True,
                            compute_dtype=jnp.bfloat16))
    assert jnp.allclose(out_bf16, ref, atol=5e-2, rtol=5e-2), \
        "bf16 mismatch vs reference"

    # 3) Per-tap accumulation path (the real-width variant that avoids the 9x
    #    im2col VMEM intermediate) and a >1-step grid over the batch.
    out_tap = jax.block_until_ready(
        basic_block_forward(x, params, last_relu=True,
                            single_dot=False, images_per_step=1))
    assert jnp.allclose(out_tap, ref, atol=1e-4, rtol=1e-4), \
        "per-tap-accumulation mismatch vs reference"

    print("KERNEL_OK")
</pallas_src>

<mosaic_0001>
module attributes {stable_mosaic.version = 11 : i64} {
  func.func @_basic_block_kernel(%arg0: i32, %arg1: memref<2x4x256xf32, #tpu.memory_space<vmem>>, %arg2: memref<4x36xf32, #tpu.memory_space<vmem>>, %arg3: memref<4x36xf32, #tpu.memory_space<vmem>>, %arg4: memref<4x1xf32, #tpu.memory_space<vmem>>, %arg5: memref<4x1xf32, #tpu.memory_space<vmem>>, %arg6: memref<9x256xf32, #tpu.memory_space<vmem>>, %arg7: memref<2x4x256xf32, #tpu.memory_space<vmem>>) attributes {dimension_semantics = [#tpu.dimension_semantics<parallel>], iteration_bounds = array<i64: 1>, scalar_prefetch = 0 : i64, scratch_operands = 0 : i64, tpu.core_type = #tpu.core_type<tc>, window_params = [{transform_indices = @transform_0, window_bounds = array<i64: 2, 4, 256>}, {pipeline_mode = #tpu.pipeline_mode<synchronous>, transform_indices = @transform_1, window_bounds = array<i64: 4, 36>}, {pipeline_mode = #tpu.pipeline_mode<synchronous>, transform_indices = @transform_2, window_bounds = array<i64: 4, 36>}, {pipeline_mode = #tpu.pipeline_mode<synchronous>, transform_indices = @transform_3, window_bounds = array<i64: 4, 1>}, {pipeline_mode = #tpu.pipeline_mode<synchronous>, transform_indices = @transform_4, window_bounds = array<i64: 4, 1>}, {pipeline_mode = #tpu.pipeline_mode<synchronous>, transform_indices = @transform_5, window_bounds = array<i64: 9, 256>}, {transform_indices = @transform_6, window_bounds = array<i64: 2, 4, 256>}]} {
    %c0 = arith.constant 0 : index
    %c0_0 = arith.constant 0 : index
    %0 = vector.load %arg6[%c0, %c0_0] : memref<9x256xf32, #tpu.memory_space<vmem>>, vector<1x256xf32>
    %1 = vector.shape_cast %0 : vector<1x256xf32> to vector<1x256xf32>
    %2 = vector.broadcast %1 : vector<1x256xf32> to vector<4x256xf32>
    %c1 = arith.constant 1 : index
    %c0_1 = arith.constant 0 : index
    %3 = vector.load %arg6[%c1, %c0_1] : memref<9x256xf32, #tpu.memory_space<vmem>>, vector<1x256xf32>
    %4 = vector.shape_cast %3 : vector<1x256xf32> to vector<1x256xf32>
    %5 = vector.broadcast %4 : vector<1x256xf32> to vector<4x256xf32>
    %c2 = arith.constant 2 : index
    %c0_2 = arith.constant 0 : index
    %6 = vector.load %arg6[%c2, %c0_2] : memref<9x256xf32, #tpu.memory_space<vmem>>, vector<1x256xf32>
    %7 = vector.shape_cast %6 : vector<1x256xf32> to vector<1x256xf32>
    %8 = vector.broadcast %7 : vector<1x256xf32> to vector<4x256xf32>
    %c3 = arith.constant 3 : index
    %c0_3 = arith.constant 0 : index
    %9 = vector.load %arg6[%c3, %c0_3] : memref<9x256xf32, #tpu.memory_space<vmem>>, vector<1x256xf32>
    %10 = vector.shape_cast %9 : vector<1x256xf32> to vector<1x256xf32>
    %11 = vector.broadcast %10 : vector<1x256xf32> to vector<4x256xf32>
    %c5 = arith.constant 5 : index
    %c0_4 = arith.constant 0 : index
    %12 = vector.load %arg6[%c5, %c0_4] : memref<9x256xf32, #tpu.memory_space<vmem>>, vector<1x256xf32>
    %13 = vector.shape_cast %12 : vector<1x256xf32> to vector<1x256xf32>
    %14 = vector.broadcast %13 : vector<1x256xf32> to vector<4x256xf32>
    %c6 = arith.constant 6 : index
    %c0_5 = arith.constant 0 : index
    %15 = vector.load %arg6[%c6, %c0_5] : memref<9x256xf32, #tpu.memory_space<vmem>>, vector<1x256xf32>
    %16 = vector.shape_cast %15 : vector<1x256xf32> to vector<1x256xf32>
    %17 = vector.broadcast %16 : vector<1x256xf32> to vector<4x256xf32>
    %c7 = arith.constant 7 : index
    %c0_6 = arith.constant 0 : index
    %18 = vector.load %arg6[%c7, %c0_6] : memref<9x256xf32, #tpu.memory_space<vmem>>, vector<1x256xf32>
    %19 = vector.shape_cast %18 : vector<1x256xf32> to vector<1x256xf32>
    %20 = vector.broadcast %19 : vector<1x256xf32> to vector<4x256xf32>
    %c8 = arith.constant 8 : index
    %c0_7 = arith.constant 0 : index
    %21 = vector.load %arg6[%c8, %c0_7] : memref<9x256xf32, #tpu.memory_space<vmem>>, vector<1x256xf32>
    %22 = vector.shape_cast %21 : vector<1x256xf32> to vector<1x256xf32>
    %23 = vector.broadcast %22 : vector<1x256xf32> to vector<4x256xf32>
    %c0_8 = arith.constant 0 : index
    %c0_9 = arith.constant 0 : index
    %24 = vector.load %arg4[%c0_8, %c0_9] : memref<4x1xf32, #tpu.memory_space<vmem>>, vector<4x1xf32>
    %25 = vector.shape_cast %24 : vector<4x1xf32> to vector<4x1xf32>
    %26 = vector.broadcast %25 : vector<4x1xf32> to vector<4x256xf32>
    %c0_10 = arith.constant 0 : index
    %c0_11 = arith.constant 0 : index
    %27 = vector.load %arg5[%c0_10, %c0_11] : memref<4x1xf32, #tpu.memory_space<vmem>>, vector<4x1xf32>
    %28 = vector.shape_cast %27 : vector<4x1xf32> to vector<4x1xf32>
    %29 = vector.broadcast %28 : vector<4x1xf32> to vector<4x256xf32>
    %c0_12 = arith.constant 0 : index
    %c0_13 = arith.constant 0 : index
    %c0_14 = arith.constant 0 : index
    %30 = vector.load %arg1[%c0_12, %c0_13, %c0_14] : memref<2x4x256xf32, #tpu.memory_space<vmem>>, vector<1x4x256xf32>
    %31 = vector.shape_cast %30 : vector<1x4x256xf32> to vector<4x256xf32>
    %c17_i32 = arith.constant 17 : i32
    %32 = tpu.dynamic_rotate %31 by %c17_i32 dim 1 : vector<4x256xf32>, i32 -> vector<4x256xf32>
    %33 = arith.mulf %32, %2 : vector<4x256xf32>
    %c16_i32 = arith.constant 16 : i32
    %34 = tpu.dynamic_rotate %31 by %c16_i32 dim 1 : vector<4x256xf32>, i32 -> vector<4x256xf32>
    %35 = arith.mulf %34, %5 : vector<4x256xf32>
    %c15_i32 = arith.constant 15 : i32
    %36 = tpu.dynamic_rotate %31 by %c15_i32 dim 1 : vector<4x256xf32>, i32 -> vector<4x256xf32>
    %37 = arith.mulf %36, %8 : vector<4x256xf32>
    %c1_i32 = arith.constant 1 : i32
    %38 = tpu.dynamic_rotate %31 by %c1_i32 dim 1 : vector<4x256xf32>, i32 -> vector<4x256xf32>
    %39 = arith.mulf %38, %11 : vector<4x256xf32>
    %c255_i32 = arith.constant 255 : i32
    %40 = tpu.dynamic_rotate %31 by %c255_i32 dim 1 : vector<4x256xf32>, i32 -> vector<4x256xf32>
    %41 = arith.mulf %40, %14 : vector<4x256xf32>
    %c241_i32 = arith.constant 241 : i32
    %42 = tpu.dynamic_rotate %31 by %c241_i32 dim 1 : vector<4x256xf32>, i32 -> vector<4x256xf32>
    %43 = arith.mulf %42, %17 : vector<4x256xf32>
    %c240_i32 = arith.constant 240 : i32
    %44 = tpu.dynamic_rotate %31 by %c240_i32 dim 1 : vector<4x256xf32>, i32 -> vector<4x256xf32>
    %45 = arith.mulf %44, %20 : vector<4x256xf32>
    %c239_i32 = arith.constant 239 : i32
    %46 = tpu.dynamic_rotate %31 by %c239_i32 dim 1 : vector<4x256xf32>, i32 -> vector<4x256xf32>
    %47 = arith.mulf %46, %23 : vector<4x256xf32>
    %c0_15 = arith.constant 0 : index
    %c0_16 = arith.constant 0 : index
    %48 = vector.load %arg2[%c0_15, %c0_16] : memref<4x36xf32, #tpu.memory_space<vmem>>, vector<4x36xf32>
    %49 = tpu.concatenate %33, %35, %37, %39, %31, %41, %43, %45, %47 in 0 : vector<4x256xf32>, vector<4x256xf32>, vector<4x256xf32>, vector<4x256xf32>, vector<4x256xf32>, vector<4x256xf32>, vector<4x256xf32>, vector<4x256xf32>, vector<4x256xf32> -> vector<36x256xf32>
    %cst = arith.constant dense<0.000000e+00> : vector<4x256xf32>
    %50 = tpu.matmul %48, %49, %cst {dimension_numbers = #tpu.dot_dimension_numbers<[1], [0], [0], [1], [0, 0, 1, 1], [], []>} : vector<4x36xf32>, vector<36x256xf32>, vector<4x256xf32> -> vector<4x256xf32>
    %51 = arith.addf %50, %26 : vector<4x256xf32>
    %cst_17 = arith.constant 0.000000e+00 : f32
    %52 = vector.broadcast %cst_17 : f32 to vector<4x256xf32>
    %53 = arith.maximumf %51, %52 : vector<4x256xf32>
    %c17_i32_18 = arith.constant 17 : i32
    %54 = tpu.dynamic_rotate %53 by %c17_i32_18 dim 1 : vector<4x256xf32>, i32 -> vector<4x256xf32>
    %55 = arith.mulf %54, %2 : vector<4x256xf32>
    %c16_i32_19 = arith.constant 16 : i32
    %56 = tpu.dynamic_rotate %53 by %c16_i32_19 dim 1 : vector<4x256xf32>, i32 -> vector<4x256xf32>
    %57 = arith.mulf %56, %5 : vector<4x256xf32>
    %c15_i32_20 = arith.constant 15 : i32
    %58 = tpu.dynamic_rotate %53 by %c15_i32_20 dim 1 : vector<4x256xf32>, i32 -> vector<4x256xf32>
    %59 = arith.mulf %58, %8 : vector<4x256xf32>
    %c1_i32_21 = arith.constant 1 : i32
    %60 = tpu.dynamic_rotate %53 by %c1_i32_21 dim 1 : vector<4x256xf32>, i32 -> vector<4x256xf32>
    %61 = arith.mulf %60, %11 : vector<4x256xf32>
    %c255_i32_22 = arith.constant 255 : i32
    %62 = tpu.dynamic_rotate %53 by %c255_i32_22 dim 1 : vector<4x256xf32>, i32 -> vector<4x256xf32>
    %63 = arith.mulf %62, %14 : vector<4x256xf32>
    %c241_i32_23 = arith.constant 241 : i32
    %64 = tpu.dynamic_rotate %53 by %c241_i32_23 dim 1 : vector<4x256xf32>, i32 -> vector<4x256xf32>
    %65 = arith.mulf %64, %17 : vector<4x256xf32>
    %c240_i32_24 = arith.constant 240 : i32
    %66 = tpu.dynamic_rotate %53 by %c240_i32_24 dim 1 : vector<4x256xf32>, i32 -> vector<4x256xf32>
    %67 = arith.mulf %66, %20 : vector<4x256xf32>
    %c239_i32_25 = arith.constant 239 : i32
    %68 = tpu.dynamic_rotate %53 by %c239_i32_25 dim 1 : vector<4x256xf32>, i32 -> vector<4x256xf32>
    %69 = arith.mulf %68, %23 : vector<4x256xf32>
    %c0_26 = arith.constant 0 : index
    %c0_27 = arith.constant 0 : index
    %70 = vector.load %arg3[%c0_26, %c0_27] : memref<4x36xf32, #tpu.memory_space<vmem>>, vector<4x36xf32>
    %71 = tpu.concatenate %55, %57, %59, %61, %53, %63, %65, %67, %69 in 0 : vector<4x256xf32>, vector<4x256xf32>, vector<4x256xf32>, vector<4x256xf32>, vector<4x256xf32>, vector<4x256xf32>, vector<4x256xf32>, vector<4x256xf32>, vector<4x256xf32> -> vector<36x256xf32>
    %cst_28 = arith.constant dense<0.000000e+00> : vector<4x256xf32>
    %72 = tpu.matmul %70, %71, %cst_28 {dimension_numbers = #tpu.dot_dimension_numbers<[1], [0], [0], [1], [0, 0, 1, 1], [], []>} : vector<4x36xf32>, vector<36x256xf32>, vector<4x256xf32> -> vector<4x256xf32>
    %73 = arith.addf %72, %29 : vector<4x256xf32>
    %74 = arith.addf %73, %31 : vector<4x256xf32>
    %cst_29 = arith.constant 0.000000e+00 : f32
    %75 = vector.broadcast %cst_29 : f32 to vector<4x256xf32>
    %76 = arith.maximumf %74, %75 : vector<4x256xf32>
    %c0_30 = arith.constant 0 : index
    %c0_31 = arith.constant 0 : index
    %c0_32 = arith.constant 0 : index
    %77 = vector.load %arg7[%c0_30, %c0_31, %c0_32] : memref<2x4x256xf32, #tpu.memory_space<vmem>>, vector<1x4x256xf32>
    %78 = vector.shape_cast %77 : vector<1x4x256xf32> to vector<4x256xf32>
    %79 = vector.shape_cast %76 : vector<4x256xf32> to vector<1x4x256xf32>
    tpu.vector_store %arg7[%c0_30, %c0_31, %c0_32], %79 {strides = array<i32>} : memref<2x4x256xf32, #tpu.memory_space<vmem>>, vector<1x4x256xf32>,
    %c1_33 = arith.constant 1 : index
    %c0_34 = arith.constant 0 : index
    %c0_35 = arith.constant 0 : index
    %80 = vector.load %arg1[%c1_33, %c0_34, %c0_35] : memref<2x4x256xf32, #tpu.memory_space<vmem>>, vector<1x4x256xf32>
    %81 = vector.shape_cast %80 : vector<1x4x256xf32> to vector<4x256xf32>
    %c17_i32_36 = arith.constant 17 : i32
    %82 = tpu.dynamic_rotate %81 by %c17_i32_36 dim 1 : vector<4x256xf32>, i32 -> vector<4x256xf32>
    %83 = arith.mulf %82, %2 : vector<4x256xf32>
    %c16_i32_37 = arith.constant 16 : i32
    %84 = tpu.dynamic_rotate %81 by %c16_i32_37 dim 1 : vector<4x256xf32>, i32 -> vector<4x256xf32>
    %85 = arith.mulf %84, %5 : vector<4x256xf32>
    %c15_i32_38 = arith.constant 15 : i32
    %86 = tpu.dynamic_rotate %81 by %c15_i32_38 dim 1 : vector<4x256xf32>, i32 -> vector<4x256xf32>
    %87 = arith.mulf %86, %8 : vector<4x256xf32>
    %c1_i32_39 = arith.constant 1 : i32
    %88 = tpu.dynamic_rotate %81 by %c1_i32_39 dim 1 : vector<4x256xf32>, i32 -> vector<4x256xf32>
    %89 = arith.mulf %88, %11 : vector<4x256xf32>
    %c255_i32_40 = arith.constant 255 : i32
    %90 = tpu.dynamic_rotate %81 by %c255_i32_40 dim 1 : vector<4x256xf32>, i32 -> vector<4x256xf32>
    %91 = arith.mulf %90, %14 : vector<4x256xf32>
    %c241_i32_41 = arith.constant 241 : i32
    %92 = tpu.dynamic_rotate %81 by %c241_i32_41 dim 1 : vector<4x256xf32>, i32 -> vector<4x256xf32>
    %93 = arith.mulf %92, %17 : vector<4x256xf32>
    %c240_i32_42 = arith.constant 240 : i32
    %94 = tpu.dynamic_rotate %81 by %c240_i32_42 dim 1 : vector<4x256xf32>, i32 -> vector<4x256xf32>
    %95 = arith.mulf %94, %20 : vector<4x256xf32>
    %c239_i32_43 = arith.constant 239 : i32
    %96 = tpu.dynamic_rotate %81 by %c239_i32_43 dim 1 : vector<4x256xf32>, i32 -> vector<4x256xf32>
    %97 = arith.mulf %96, %23 : vector<4x256xf32>
    %c0_44 = arith.constant 0 : index
    %c0_45 = arith.constant 0 : index
    %98 = vector.load %arg2[%c0_44, %c0_45] : memref<4x36xf32, #tpu.memory_space<vmem>>, vector<4x36xf32>
    %99 = tpu.concatenate %83, %85, %87, %89, %81, %91, %93, %95, %97 in 0 : vector<4x256xf32>, vector<4x256xf32>, vector<4x256xf32>, vector<4x256xf32>, vector<4x256xf32>, vector<4x256xf32>, vector<4x256xf32>, vector<4x256xf32>, vector<4x256xf32> -> vector<36x256xf32>
    %cst_46 = arith.constant dense<0.000000e+00> : vector<4x256xf32>
    %100 = tpu.matmul %98, %99, %cst_46 {dimension_numbers = #tpu.dot_dimension_numbers<[1], [0], [0], [1], [0, 0, 1, 1], [], []>} : vector<4x36xf32>, vector<36x256xf32>, vector<4x256xf32> -> vector<4x256xf32>
    %101 = arith.addf %100, %26 : vector<4x256xf32>
    %cst_47 = arith.constant 0.000000e+00 : f32
    %102 = vector.broadcast %cst_47 : f32 to vector<4x256xf32>
    %103 = arith.maximumf %101, %102 : vector<4x256xf32>
    %c17_i32_48 = arith.constant 17 : i32
    %104 = tpu.dynamic_rotate %103 by %c17_i32_48 dim 1 : vector<4x256xf32>, i32 -> vector<4x256xf32>
    %105 = arith.mulf %104, %2 : vector<4x256xf32>
    %c16_i32_49 = arith.constant 16 : i32
    %106 = tpu.dynamic_rotate %103 by %c16_i32_49 dim 1 : vector<4x256xf32>, i32 -> vector<4x256xf32>
    %107 = arith.mulf %106, %5 : vector<4x256xf32>
    %c15_i32_50 = arith.constant 15 : i32
    %108 = tpu.dynamic_rotate %103 by %c15_i32_50 dim 1 : vector<4x256xf32>, i32 -> vector<4x256xf32>
    %109 = arith.mulf %108, %8 : vector<4x256xf32>
    %c1_i32_51 = arith.constant 1 : i32
    %110 = tpu.dynamic_rotate %103 by %c1_i32_51 dim 1 : vector<4x256xf32>, i32 -> vector<4x256xf32>
    %111 = arith.mulf %110, %11 : vector<4x256xf32>
    %c255_i32_52 = arith.constant 255 : i32
    %112 = tpu.dynamic_rotate %103 by %c255_i32_52 dim 1 : vector<4x256xf32>, i32 -> vector<4x256xf32>
    %113 = arith.mulf %112, %14 : vector<4x256xf32>
    %c241_i32_53 = arith.constant 241 : i32
    %114 = tpu.dynamic_rotate %103 by %c241_i32_53 dim 1 : vector<4x256xf32>, i32 -> vector<4x256xf32>
    %115 = arith.mulf %114, %17 : vector<4x256xf32>
    %c240_i32_54 = arith.constant 240 : i32
    %116 = tpu.dynamic_rotate %103 by %c240_i32_54 dim 1 : vector<4x256xf32>, i32 -> vector<4x256xf32>
    %117 = arith.mulf %116, %20 : vector<4x256xf32>
    %c239_i32_55 = arith.constant 239 : i32
    %118 = tpu.dynamic_rotate %103 by %c239_i32_55 dim 1 : vector<4x256xf32>, i32 -> vector<4x256xf32>
    %119 = arith.mulf %118, %23 : vector<4x256xf32>
    %c0_56 = arith.constant 0 : index
    %c0_57 = arith.constant 0 : index
    %120 = vector.load %arg3[%c0_56, %c0_57] : memref<4x36xf32, #tpu.memory_space<vmem>>, vector<4x36xf32>
    %121 = tpu.concatenate %105, %107, %109, %111, %103, %113, %115, %117, %119 in 0 : vector<4x256xf32>, vector<4x256xf32>, vector<4x256xf32>, vector<4x256xf32>, vector<4x256xf32>, vector<4x256xf32>, vector<4x256xf32>, vector<4x256xf32>, vector<4x256xf32> -> vector<36x256xf32>
    %cst_58 = arith.constant dense<0.000000e+00> : vector<4x256xf32>
    %122 = tpu.matmul %120, %121, %cst_58 {dimension_numbers = #tpu.dot_dimension_numbers<[1], [0], [0], [1], [0, 0, 1, 1], [], []>} : vector<4x36xf32>, vector<36x256xf32>, vector<4x256xf32> -> vector<4x256xf32>
    %123 = arith.addf %122, %29 : vector<4x256xf32>
    %124 = arith.addf %123, %81 : vector<4x256xf32>
    %cst_59 = arith.constant 0.000000e+00 : f32
    %125 = vector.broadcast %cst_59 : f32 to vector<4x256xf32>
    %126 = arith.maximumf %124, %125 : vector<4x256xf32>
    %c1_60 = arith.constant 1 : index
    %c0_61 = arith.constant 0 : index
    %c0_62 = arith.constant 0 : index
    %127 = vector.load %arg7[%c1_60, %c0_61, %c0_62] : memref<2x4x256xf32, #tpu.memory_space<vmem>>, vector<1x4x256xf32>
    %128 = vector.shape_cast %127 : vector<1x4x256xf32> to vector<4x256xf32>
    %129 = vector.shape_cast %126 : vector<4x256xf32> to vector<1x4x256xf32>
    tpu.vector_store %arg7[%c1_60, %c0_61, %c0_62], %129 {strides = array<i32>} : memref<2x4x256xf32, #tpu.memory_space<vmem>>, vector<1x4x256xf32>,
    return
  }
  func.func @transform_0(%arg0: i32) -> (i32, i32, i32) {
    %c0_i32 = arith.constant 0 : i32
    %c0_i32_0 = arith.constant 0 : i32
    %c0_i32_1 = arith.constant 0 : i32
    return %arg0, %c0_i32, %c0_i32_0 : i32, i32, i32
  }
  func.func @transform_1(%arg0: i32) -> (i32, i32) {
    %c0_i32 = arith.constant 0 : i32
    %c0_i32_0 = arith.constant 0 : i32
    %c0_i32_1 = arith.constant 0 : i32
    return %c0_i32, %c0_i32_0 : i32, i32
  }
  func.func @transform_2(%arg0: i32) -> (i32, i32) {
    %c0_i32 = arith.constant 0 : i32
    %c0_i32_0 = arith.constant 0 : i32
    %c0_i32_1 = arith.constant 0 : i32
    return %c0_i32, %c0_i32_0 : i32, i32
  }
  func.func @transform_3(%arg0: i32) -> (i32, i32) {
    %c0_i32 = arith.constant 0 : i32
    %c0_i32_0 = arith.constant 0 : i32
    %c0_i32_1 = arith.constant 0 : i32
    return %c0_i32, %c0_i32_0 : i32, i32
  }
  func.func @transform_4(%arg0: i32) -> (i32, i32) {
    %c0_i32 = arith.constant 0 : i32
    %c0_i32_0 = arith.constant 0 : i32
    %c0_i32_1 = arith.constant 0 : i32
    return %c0_i32, %c0_i32_0 : i32, i32
  }
  func.func @transform_5(%arg0: i32) -> (i32, i32) {
    %c0_i32 = arith.constant 0 : i32
    %c0_i32_0 = arith.constant 0 : i32
    %c0_i32_1 = arith.constant 0 : i32
    return %c0_i32, %c0_i32_0 : i32, i32
  }
  func.func @transform_6(%arg0: i32) -> (i32, i32, i32) {
    %c0_i32 = arith.constant 0 : i32
    %c0_i32_0 = arith.constant 0 : i32
    %c0_i32_1 = arith.constant 0 : i32
    return %arg0, %c0_i32, %c0_i32_0 : i32, i32, i32
  }
}

</mosaic_0001>

<bundles_post_ra>
// kernel: tpu_custom_call.1
= control target key start
LH: loop header
LB: loop body
LE: loop exit
PB: predicated region body
PF: predicated region fallthrough
CT: control target
= control target key end

     0   :  { %11 = vsyncpa [#allocation3], 0  ;;  %s1646_s0 = inlined_call_operand.hbm [shape: f32[2,4,256], index: 0, kind: input, shape index: {}]   ;;  %s1647_s1 = inlined_call_operand.vmem [shape: f32[4,36], index: 1, kind: input, shape index: {}]   ;;  %s1648_s2 = inlined_call_operand.vmem [shape: f32[4,36], index: 2, kind: input, shape index: {}]   ;;  %s1649_s3 = inlined_call_operand.vmem [shape: f32[4,1], index: 3, kind: input, shape index: {}]   ;;  %s1650_s4 = inlined_call_operand.vmem [shape: f32[4,1], index: 4, kind: input, shape index: {}]   ;;  %s1651_s5 = inlined_call_operand.hbm [shape: f32[9,256], index: 5, kind: input, shape index: {}]   ;;  %s1652_s6 = inlined_call_operand.hbm [shape: f32[2,4,256], index: 6, kind: output, shape index: {}]  }
   0x1   :  { %12 = vsyncpa [#allocation6], 0 }
   0x2   :  { %13 = vsyncpa [#allocation4], 0  ;;  %s1072_s21 = smov [#allocation2]   ;;  %s1000_s25 = scalar_lea.hbm %s1646_s0, 256 }
   0x3   :  { %s19_s22 = sshll.u32 %s1072_s21, 4  ;;  %p1001_p0 = scmp.ne.s32.totalorder %s1646_s0, %s1000_s25  ;;  %s20_s22 = int_to_ptr.vmem [resolvable:$true] %s19_s22 }
   0x4   :  { %p1004_p1 = scmp.lt.u32.totalorder %s1000_s25, %s1646_s0 }
   0x6   :  { %p1006_p2 = pnand %p1004_p1, %p1001_p0 }
   0x8   :  { %1009 = shalt.err (!%p1006_p2)
}
   0x9   :  { %s1010_s30 = scalar_lea.vmem %s20_s22, 256  ;;  %p1015_p4 = scmp.lt.s32.totalorder %s20_s22, %s20_s22 }
   0xa   :  { %p1011_p3 = scmp.ne.s32.totalorder %s20_s22, %s1010_s30  ;;  %p1016_p5 = scmp.lt.s32.totalorder %s1010_s30, %s1010_s30 }
   0xc   :  { %p1017_p6 = por %p1016_p5, %p1015_p4 }
   0xe   :  { %p1018_p7 = pnand %p1017_p6, %p1011_p3 }
  0x10   :  { %1021 = shalt.err (!%p1018_p7)
}
  0x11   :  { %s1073_s7 = smov 128   ;;  %s1074_s8 = smov 8  }
  0x12   :  { %25 = dma.hbm_to_vmem [thread:$0]  %s1646_s0, 256, %s20_s22, [#allocation3], %s1073_s7, %s1073_s7, %s1074_s8  }
  0x13   :  { %s1075_s11 = smov [#allocation5]   ;;  %s1022_s15 = scalar_lea.hbm %s1651_s5, 512 }
  0x14   :  { %s39_s12 = sshll.u32 %s1075_s11, 4  ;;  %p1023_p8 = scmp.ne.s32.totalorder %s1651_s5, %s1022_s15  ;;  %s40_s12 = int_to_ptr.vmem [resolvable:$true] %s39_s12 }
  0x15   :  { %p1026_p9 = scmp.lt.u32.totalorder %s1022_s15, %s1651_s5 }
  0x17   :  { %p1028_p10 = pnand %p1026_p9, %p1023_p8 }
  0x19   :  { %1031 = shalt.err (!%p1028_p10)
}
  0x1a   :  { %s1032_s20 = scalar_lea.vmem %s40_s12, 512  ;;  %p1037_p12 = scmp.lt.s32.totalorder %s40_s12, %s40_s12 }
  0x1b   :  { %p1033_p11 = scmp.ne.s32.totalorder %s40_s12, %s1032_s20  ;;  %p1038_p13 = scmp.lt.s32.totalorder %s1032_s20, %s1032_s20 }
  0x1d   :  { %p1039_p0 = por %p1038_p13, %p1037_p12 }
  0x1f   :  { %p1040_p1 = pnand %p1039_p0, %p1033_p11 }
  0x21   :  { %1043 = shalt.err (!%p1040_p1)
}
  0x22   :  { %s1076_s0 = smov 256   ;;  %s1077_s21 = smov 16  }
  0x23   :  { %45 = dma.hbm_to_vmem [thread:$0]  %s1651_s5, 512, %s40_s12, [#allocation6], %s1076_s0, %s1076_s0, %s1077_s21  }
  0x24   :  { %1066 = dma.done.wait [#allocation3], 256  }
  0x25   :  { %1067 = vsyncadd [#allocation3], 4294967040 }
  0x26   :  { %1068 = dma.done.wait [#allocation6], 512  }
  0x27   :  { %1069 = vsyncadd [#allocation6], 4294966784  ;;  %v1151_v0 = vld [vmem:[#allocation2] sm:$0xff]  ;;  %s1078_s24 = smov 1   ;;  %s1079_s25 = smov 17   ;;  %v1181_v2 = vld [vmem:[#allocation2 + $0x8] sm:$0xff]  ;;  %v54_v7 = vlaneseq }
  0x28   :  { %200 = vrot.lane.b32.xlu1 %v1151_v0, %s1078_s24  ;;  %182 = vrot.lane.b32.xlu0 %v1151_v0, %s1077_s21  ;;  %v1159_v1 = vcombine.high %v1151_v0, %v1151_v0  ;;  %s1080_s5 = smov 15   ;;  %s1081_s26 = smov 127   ;;  %v1189_v3 = vcombine.high %v1181_v2, %v1181_v2  ;;  %v1084_v4 = vmov 0.0   ;;  %v1086_v5 = vmov 0   ;;  %v155_v6 = vld [vmem:[%s1649_s3] sm:$0xf] }
  0x29   :  { %s1082_s27 = smov 112   ;;  %s1083_s28 = smov 113   ;;  %353 = vmatprep.mubr.f32.mxu0 %v1084_v4  ;;  %532 = vmatprep.mubr.f32.mxu1 %v1084_v4  ;;  %v55_v8 = vshrl.u32 %v54_v7, 7  ;;  %v1232_v9 = vand.u32 127, %v54_v7  ;;  %vm270_vm4 = vcmask 1043456   ;;  %vm279_vm9 = vcmask 293888  }
  0x2a   :  { %s1085_s29 = smov 111   ;;  %997 = vset.pattern.permute.xlu0 %v1086_v5  ;;  %v91_v14 = vld [vmem:[#allocation5 + $0x3] ss:$8 sm:$0x3] }
  0x2b   :  { %v1234_v12 = vsub.s32 0, %v55_v8  ;;  %v1236_v13 = vsub.s32 1, %v55_v8  ;;  %vm204_vm0 = vcmp.lt.s32.totalorder %v1232_v9, 1  ;;  %v65_v15 = vld [vmem:[#allocation5 + $0x1] ss:$8 sm:$0x3] }
  0x2c   :  { %171 = vrot.lane.b32.xlu0 %v1151_v0, %s1079_s25  ;;  %202 = vrot.lane.b32.xlu1 %v1159_v1, %s1078_s24  ;;  %v52_v20 = vld [vmem:[#allocation5] ss:$8 sm:$0x3]  ;;  %vm186_vm1 = vcmp.lt.s32.totalorder %v1232_v9, 16  ;;  %vm177_vm2 = vcmp.lt.s32.totalorder %v1232_v9, 17  ;;  %vm195_vm3 = vcmp.lt.s32.totalorder %v1232_v9, 15 }
  0x2d   :  { %v1240_v18 = vrot.slane %v91_v14, %v1234_v12  ;;  %v1243_v19 = vrot.slane %v91_v14, %v1236_v13  ;;  %v1251_v23 = vrot.slane %v65_v15, %v1234_v12  ;;  %v1254_v24 = vrot.slane %v65_v15, %v1236_v13  ;;  %v78_v25 = vld [vmem:[#allocation5 + $0x2] ss:$8 sm:$0x3]  ;;  %v104_v44 = vld [vmem:[#allocation5 + $0x5] ss:$8 sm:$0x3] }
  0x2e   :  { %v1258_v27 = vrot.slane %v52_v20, %v1234_v12  ;;  %v1261_v28 = vrot.slane %v52_v20, %v1236_v13  ;;  %v1273_v36 = vrot.slane %v78_v25, %v1234_v12  ;;  %v1276_v37 = vrot.slane %v78_v25, %v1236_v13  ;;  %v130_v55 = vld [vmem:[#allocation5 + $0x7] ss:$8 sm:$0x3] }
  0x2f   :  { %vm213_vm5 = vcmp.lt.s32.totalorder %v1232_v9, 127  ;;  %v1292_v53 = vrot.slane %v104_v44, %v1234_v12  ;;  %v1295_v54 = vrot.slane %v104_v44, %v1236_v13  ;;  %vm231_vm6 = vcmp.lt.s32.totalorder %v1232_v9, 112 }
  0x30   :  { %173 = vrot.lane.b32.xlu1 %v1159_v1, %s1079_s25  ;;  %184 = vrot.lane.b32.xlu0 %v1159_v1, %s1077_s21  ;;  %v1307_v7 = vrot.slane %v130_v55, %v1234_v12  ;;  %v1310_v8 = vrot.slane %v130_v55, %v1236_v13  ;;  %vm222_vm7 = vcmp.lt.s32.totalorder %v1232_v9, 113  ;;  %vm240_vm8 = vcmp.lt.s32.totalorder %v1232_v9, 111 }
  0x34   :  { %193 = vrot.lane.b32.xlu1 %v1159_v1, %s1080_s5  ;;  %191 = vrot.lane.b32.xlu0 %v1151_v0, %s1080_s5 }
  0x38   :  { %211 = vrot.lane.b32.xlu1 %v1159_v1, %s1081_s26  ;;  %209 = vrot.lane.b32.xlu0 %v1151_v0, %s1081_s26 }
  0x3c   :  { %229 = vrot.lane.b32.xlu1 %v1159_v1, %s1082_s27  ;;  %227 = vrot.lane.b32.xlu0 %v1151_v0, %s1082_s27 }
  0x40   :  { %220 = vrot.lane.b32.xlu1 %v1159_v1, %s1083_s28  ;;  %218 = vrot.lane.b32.xlu0 %v1151_v0, %s1083_s28 }
  0x44   :  { %563 = vrot.lane.b32.xlu1 %v1189_v3, %s1077_s21  ;;  %561 = vrot.lane.b32.xlu0 %v1181_v2, %s1077_s21 }
  0x48   :  { %579 = vrot.lane.b32.xlu1 %v1189_v3, %s1078_s24  ;;  %577 = vrot.lane.b32.xlu0 %v1181_v2, %s1078_s24 }
  0x4c   :  { %555 = vrot.lane.b32.xlu1 %v1189_v3, %s1079_s25  ;;  %553 = vrot.lane.b32.xlu0 %v1181_v2, %s1079_s25 }
  0x50   :  { %571 = vrot.lane.b32.xlu1 %v1189_v3, %s1080_s5  ;;  %569 = vrot.lane.b32.xlu0 %v1181_v2, %s1080_s5 }
  0x54   :  { %238 = vrot.lane.b32.xlu1 %v1159_v1, %s1085_s29  ;;  %236 = vrot.lane.b32.xlu0 %v1151_v0, %s1085_s29 }
  0x58   :  { %587 = vrot.lane.b32.xlu1 %v1189_v3, %s1081_s26  ;;  %585 = vrot.lane.b32.xlu0 %v1181_v2, %s1081_s26 }
  0x5c   :  { %603 = vrot.lane.b32.xlu1 %v1189_v3, %s1082_s27  ;;  %601 = vrot.lane.b32.xlu0 %v1181_v2, %s1082_s27 }
  0x60   :  { %595 = vrot.lane.b32.xlu1 %v1189_v3, %s1083_s28  ;;  %593 = vrot.lane.b32.xlu0 %v1181_v2, %s1083_s28 }
  0x64   :  { %611 = vrot.lane.b32.xlu1 %v1189_v3, %s1085_s29  ;;  %609 = vrot.lane.b32.xlu0 %v1181_v2, %s1085_s29 }
  0x68   :  { %158 = vperm.xlu0 %997, %v155_v6  }
  0x9a   :  { %v201_v10 = vpop.permute.xlu1 %200  ;;  %v183_v11 = vpop.permute.xlu0 %182 }
  0x9e   :  { %v172_v16 = vpop.permute.xlu0 %171  ;;  %v203_v17 = vpop.permute.xlu1 %202 }
  0x9f   :  { %v205_v21 = vsel %vm204_vm0, %v201_v10, %v203_v17  ;;  %v206_v22 = vsel %vm204_vm0, %v203_v17, %v201_v10  ;;  %v117_v10 = vld [vmem:[#allocation5 + $0x6] ss:$8 sm:$0x3] }
  0xa0   :  { %v207_v30 = vmul.f32 %v206_v22, %v1240_v18  ;;  %v208_v31 = vmul.f32 %v205_v21, %v1243_v19  ;;  %v1322_v25 = vrot.slane %v117_v10, %v1234_v12 }
  0xa2   :  { %v174_v26 = vpop.permute.xlu1 %173  ;;  %v185_v29 = vpop.permute.xlu0 %184  ;;  %v254_v45 = vrot.slane %v207_v30, 4  ;;  %v255_v46 = vrot.slane %v208_v31, 4 }
  0xa3   :  { %v187_v32 = vsel %vm186_vm1, %v183_v11, %v185_v29  ;;  %v188_v33 = vsel %vm186_vm1, %v185_v29, %v183_v11  ;;  %v178_v38 = vsel %vm177_vm2, %v172_v16, %v174_v26  ;;  %v179_v39 = vsel %vm177_vm2, %v174_v26, %v172_v16 }
  0xa4   :  { %v189_v34 = vmul.f32 %v188_v33, %v1251_v23  ;;  %v190_v35 = vmul.f32 %v187_v32, %v1254_v24  ;;  %v180_v49 = vmul.f32 %v179_v39, %v1258_v27  ;;  %v181_v50 = vmul.f32 %v178_v38, %v1261_v28 }
  0xa5   :  { %v1325_v26 = vrot.slane %v117_v10, %v1236_v13 }
  0xa6   :  { %v248_v40 = vrot.slane %v189_v34, 4  ;;  %v249_v41 = vrot.slane %v190_v35, 4  ;;  %v194_v42 = vpop.permute.xlu1 %193  ;;  %v192_v43 = vpop.permute.xlu0 %191 }
  0xa7   :  { %v196_v47 = vsel %vm195_vm3, %v192_v43, %v194_v42  ;;  %v197_v48 = vsel %vm195_vm3, %v194_v42, %v192_v43 }
  0xa8   :  { %v198_v51 = vmul.f32 %v197_v48, %v1273_v36  ;;  %v199_v52 = vmul.f32 %v196_v47, %v1276_v37  ;;  %v272_v58 = vsel %vm270_vm4, %v181_v50, %v249_v41  ;;  %v271_v60 = vsel %vm270_vm4, %v180_v49, %v248_v40 }
  0xaa   :  { %v212_v56 = vpop.permute.xlu1 %211  ;;  %v210_v57 = vpop.permute.xlu0 %209  ;;  %v274_v59 = vsel %vm270_vm4, %v199_v52, %v255_v46  ;;  %v273_v61 = vsel %vm270_vm4, %v198_v51, %v254_v45 }
  0xab   :  { %v214_v62 = vsel %vm213_vm5, %v210_v57, %v212_v56  ;;  %v215_v63 = vsel %vm213_vm5, %v212_v56, %v210_v57  ;;  %v949_v5 = vpack.c.bf16 %v274_v59, %v272_v58  ;;  %v951_v6 = vpack.c.bf16 %v273_v61, %v271_v60  ;;  %v143_v57 = vld [vmem:[#allocation5 + $0x10] ss:$8 sm:$0x3] }
  0xac   :  { %v216_v11 = vmul.f32 %v214_v62, %v1292_v53  ;;  %v217_v14 = vmul.f32 %v215_v63, %v1295_v54 }
  0xad   :  { %950 = vmatprep.subr.bf16.mxu0 %v949_v5 }
  0xae   :  { %v230_v15 = vpop.permute.xlu1 %229  ;;  %v228_v16 = vpop.permute.xlu0 %227  ;;  %952 = vmatpush1.bf16.msra.mxu0 %v951_v6  ;;  %v260_v29 = vrot.slane %v216_v11, 4  ;;  %v261_v30 = vrot.slane %v217_v14, 4  ;;  %v1353_v6 = vrot.slane %v143_v57, %v1234_v12  ;;  %v1366_v12 = vrot.slane %v143_v57, %v1236_v13 }
  0xaf   :  { %v232_v17 = vsel %vm231_vm6, %v228_v16, %v230_v15  ;;  %v233_v20 = vsel %vm231_vm6, %v230_v15, %v228_v16 }
  0xb0   :  { %v234_v21 = vmul.f32 %v232_v17, %v1307_v7  ;;  %v235_v22 = vmul.f32 %v233_v20, %v1310_v8  ;;  %v276_v43 = vsel %vm270_vm4, %v1159_v1, %v261_v30  ;;  %v275_v45 = vsel %vm270_vm4, %v1151_v0, %v260_v29 }
  0xb2   :  { %v221_v31 = vpop.permute.xlu1 %220  ;;  %v219_v32 = vpop.permute.xlu0 %218  ;;  %v266_v35 = vrot.slane %v234_v21, 4  ;;  %v267_v38 = vrot.slane %v235_v22, 4 }
  0xb3   :  { %v223_v33 = vsel %vm222_vm7, %v219_v32, %v221_v31  ;;  %v224_v34 = vsel %vm222_vm7, %v221_v31, %v219_v32 }
  0xb4   :  { %v225_v39 = vmul.f32 %v223_v33, %v1322_v25  ;;  %v226_v40 = vmul.f32 %v224_v34, %v1325_v26 }
  0xb6   :  { %v564_v41 = vpop.permute.xlu1 %563  ;;  %v562_v42 = vpop.permute.xlu0 %561  ;;  %v278_v44 = vsel %vm270_vm4, %v226_v40, %v267_v38  ;;  %v277_v46 = vsel %vm270_vm4, %v225_v39, %v266_v35 }
  0xb7   :  { %v953_v47 = vpack.c.bf16 %v278_v44, %v276_v43  ;;  %v955_v48 = vpack.c.bf16 %v277_v46, %v275_v45  ;;  %v565_v58 = vsel %vm186_vm1, %v562_v42, %v564_v41  ;;  %v566_v59 = vsel %vm186_vm1, %v564_v41, %v562_v42  ;;  %v245_v42 = vld [vmem:[%s1647_s1] sm:$0xf] }
  0xb8   :  { %v568_v10 = vmul.f32 %v565_v58, %v1254_v24  ;;  %v567_v16 = vmul.f32 %v566_v59, %v1251_v23 }
  0xb9   :  { %954 = vmatprep.subr.bf16.mxu0 %v953_v47 }
  0xba   :  { %v580_v49 = vpop.permute.xlu1 %579  ;;  %v578_v50 = vpop.permute.xlu0 %577  ;;  %956 = vmatpush1.bf16.msra.mxu0 %v955_v48  ;;  %v621_v33 = vrot.slane %v568_v10, 4  ;;  %v620_v39 = vrot.slane %v567_v16, 4 }
  0xbb   :  { %v581_v51 = vsel %vm204_vm0, %v578_v50, %v580_v49  ;;  %v582_v56 = vsel %vm204_vm0, %v580_v49, %v578_v50 }
  0xbc   :  { %v584_v60 = vmul.f32 %v581_v51, %v1243_v19  ;;  %v583_v61 = vmul.f32 %v582_v56, %v1240_v18 }
  0xbe   :  { %v556_v52 = vpop.permute.xlu1 %555  ;;  %v554_v55 = vpop.permute.xlu0 %553  ;;  %v627_v21 = vrot.slane %v584_v60, 4  ;;  %v626_v29 = vrot.slane %v583_v61, 4 }
  0xbf   :  { %v557_v62 = vsel %vm177_vm2, %v554_v55, %v556_v52  ;;  %v558_v11 = vsel %vm177_vm2, %v556_v52, %v554_v55 }
  0xc0   :  { %v560_v22 = vmul.f32 %v557_v62, %v1261_v28  ;;  %v559_v30 = vmul.f32 %v558_v11, %v1258_v27 }
  0xc2   :  { %v572_v63 = vpop.permute.xlu1 %571  ;;  %v570_v5 = vpop.permute.xlu0 %569  ;;  %v643_v43 = vsel %vm270_vm4, %v560_v22, %v621_v33  ;;  %v642_v44 = vsel %vm270_vm4, %v559_v30, %v620_v39 }
  0xc3   :  { %v573_v14 = vsel %vm195_vm3, %v570_v5, %v572_v63  ;;  %v574_v15 = vsel %vm195_vm3, %v572_v63, %v570_v5 }
  0xc4   :  { %v575_v17 = vmul.f32 %v574_v15, %v1273_v36  ;;  %v576_v20 = vmul.f32 %v573_v14, %v1276_v37 }
  0xc6   :  { %v239_v31 = vpop.permute.xlu1 %238  ;;  %v237_v32 = vpop.permute.xlu0 %236  ;;  %v645_v38 = vsel %vm270_vm4, %v576_v20, %v627_v21  ;;  %v644_v13 = vsel %vm270_vm4, %v575_v17, %v626_v29 }
  0xc7   :  { %v241_v34 = vsel %vm240_vm8, %v237_v32, %v239_v31  ;;  %v242_v35 = vsel %vm240_vm8, %v239_v31, %v237_v32  ;;  %v965_v47 = vpack.c.bf16 %v645_v38, %v643_v43  ;;  %v967_v50 = vpack.c.bf16 %v644_v13, %v642_v44  ;;  %v617_v13 = vld [vmem:[%s1647_s1] sm:$0xf] }
  0xc8   :  { %v243_v40 = vmul.f32 %v241_v34, %v1353_v6  ;;  %v244_v41 = vmul.f32 %v242_v35, %v1366_v12 }
  0xca   :  { %v588_v45 = vpop.permute.xlu1 %587  ;;  %v586_v46 = vpop.permute.xlu0 %585  ;;  %937 = vmatprep.subr.msk.mxu0 %vm270_vm4, %v244_v41 }
  0xcb   :  { %v589_v48 = vsel %vm213_vm5, %v586_v46, %v588_v45  ;;  %v590_v49 = vsel %vm213_vm5, %v588_v45, %v586_v46  ;;  %938 = vmatpush1.msk.msra.mxu0 %vm270_vm4, %v243_v40 }
  0xcc   :  { %v591_v51 = vmul.f32 %v589_v48, %v1292_v53  ;;  %v592_v52 = vmul.f32 %v590_v49, %v1295_v54  ;;  %939 = vmatmul.mubr.msk.f32.vlgmr.msra.gmra.mrb[0].mxu0 %vm279_vm9, %v245_v42  ;;  %966 = vmatprep.subr.bf16.mxu0 %v965_v47 }
  0xcd   :  { %968 = vmatpush1.bf16.msra.mxu0 %v967_v50  ;;  %723 = vmatprep.mubr.f32.mxu0 %v1084_v4 }
  0xce   :  { %v604_v55 = vpop.permute.xlu1 %603  ;;  %v602_v56 = vpop.permute.xlu0 %601  ;;  %v632_v59 = vrot.slane %v591_v51, 4  ;;  %v633_v60 = vrot.slane %v592_v52, 4 }
  0xcf   :  { %v605_v57 = vsel %vm231_vm6, %v602_v56, %v604_v55  ;;  %v606_v58 = vsel %vm231_vm6, %v604_v55, %v602_v56  ;;  %v161_v55 = vld [vmem:[%s1650_s4] sm:$0xf] }
  0xd0   :  { %v607_v61 = vmul.f32 %v605_v57, %v1307_v7  ;;  %v608_v62 = vmul.f32 %v606_v58, %v1310_v8  ;;  %v646_v16 = vsel %vm270_vm4, %v1181_v2, %v632_v59  ;;  %v647_v21 = vsel %vm270_vm4, %v1189_v3, %v633_v60 }
  0xd2   :  { %v638_v63 = vrot.slane %v607_v61, 4  ;;  %v639_v5 = vrot.slane %v608_v62, 4  ;;  %v596_v10 = vpop.permute.xlu1 %595  ;;  %v594_v11 = vpop.permute.xlu0 %593 }
  0xd3   :  { %v597_v14 = vsel %vm222_vm7, %v594_v11, %v596_v10  ;;  %v598_v15 = vsel %vm222_vm7, %v596_v10, %v594_v11 }
  0xd4   :  { %v599_v17 = vmul.f32 %v597_v14, %v1322_v25  ;;  %v600_v20 = vmul.f32 %v598_v15, %v1325_v26 }
  0xd6   :  { %v648_v22 = vsel %vm270_vm4, %v599_v17, %v638_v63  ;;  %v612_v29 = vpop.permute.xlu1 %611  ;;  %v610_v30 = vpop.permute.xlu0 %609  ;;  %v649_v31 = vsel %vm270_vm4, %v600_v20, %v639_v5 }
  0xd7   :  { %v613_v32 = vsel %vm240_vm8, %v610_v30, %v612_v29  ;;  %v614_v33 = vsel %vm240_vm8, %v612_v29, %v610_v30  ;;  %v969_v34 = vpack.c.bf16 %v649_v31, %v647_v21  ;;  %v971_v35 = vpack.c.bf16 %v648_v22, %v646_v16 }
  0xd8   :  { %v616_v38 = vmul.f32 %v614_v33, %v1366_v12  ;;  %v615_v39 = vmul.f32 %v613_v32, %v1353_v6 }
  0xd9   :  { %970 = vmatprep.subr.bf16.mxu0 %v969_v34 }
  0xda   :  { %972 = vmatpush1.bf16.msra.mxu0 %v971_v35 }
  0xdb   :  { %943 = vmatprep.subr.msk.mxu0 %vm270_vm4, %v616_v38 }
  0xde   :  { %944 = vmatpush1.msk.msra.mxu0 %vm270_vm4, %v615_v39 }
  0xdf   :  { %945 = vmatmul.mubr.msk.f32.vlgmr.msra.gmra.mrb[2].mxu0 %vm279_vm9, %v617_v13 }
  0xe7   :  { %v159_v40 = vpop.permute.xlu0 %158 }
 0x19f   :  { %v355_v41 = vpop.f32.mrb[0].mxu0 }
 0x1a0   :  { %v356_v42 = vadd.f32 %v355_v41, %v159_v40  ;;  %v357_v43 = vpop.f32.mrb[1].mxu0 }
 0x1a1   :  { %v358_v45 = vadd.f32 %v357_v43, %v159_v40 }
 0x1a2   :  { %v1423_v44 = vmax.f32 %v356_v42, 0.0 }
 0x1a3   :  { %v1429_v46 = vmax.f32 %v358_v45, 0.0 }
 0x1a4   :  { %386 = vrot.lane.b32.xlu0 %v1423_v44, %s1078_s24  ;;  %370 = vrot.lane.b32.xlu1 %v1423_v44, %s1077_s21 }
 0x1a8   :  { %362 = vrot.lane.b32.xlu0 %v1423_v44, %s1079_s25  ;;  %372 = vrot.lane.b32.xlu1 %v1429_v46, %s1077_s21 }
 0x1ac   :  { %378 = vrot.lane.b32.xlu0 %v1423_v44, %s1080_s5  ;;  %388 = vrot.lane.b32.xlu1 %v1429_v46, %s1078_s24 }
 0x1b0   :  { %394 = vrot.lane.b32.xlu0 %v1423_v44, %s1081_s26  ;;  %364 = vrot.lane.b32.xlu1 %v1429_v46, %s1079_s25 }
 0x1b2   :  { %v725_v47 = vpop.f32.mrb[2].mxu0 }
 0x1b3   :  { %v727_v48 = vpop.f32.mrb[3].mxu0  ;;  %v726_v49 = vadd.f32 %v725_v47, %v159_v40 }
 0x1b4   :  { %410 = vrot.lane.b32.xlu0 %v1423_v44, %s1082_s27  ;;  %380 = vrot.lane.b32.xlu1 %v1429_v46, %s1080_s5  ;;  %v728_v51 = vadd.f32 %v727_v48, %v159_v40 }
 0x1b5   :  { %v1455_v50 = vmax.f32 %v726_v49, 0.0 }
 0x1b6   :  { %v1465_v52 = vmax.f32 %v728_v51, 0.0 }
 0x1b8   :  { %402 = vrot.lane.b32.xlu0 %v1423_v44, %s1083_s28  ;;  %396 = vrot.lane.b32.xlu1 %v1429_v46, %s1081_s26 }
 0x1bc   :  { %418 = vrot.lane.b32.xlu0 %v1423_v44, %s1085_s29  ;;  %412 = vrot.lane.b32.xlu1 %v1429_v46, %s1082_s27 }
 0x1c0   :  { %740 = vrot.lane.b32.xlu0 %v1455_v50, %s1077_s21  ;;  %404 = vrot.lane.b32.xlu1 %v1429_v46, %s1083_s28 }
 0x1c4   :  { %756 = vrot.lane.b32.xlu0 %v1455_v50, %s1078_s24  ;;  %420 = vrot.lane.b32.xlu1 %v1429_v46, %s1085_s29 }
 0x1c8   :  { %732 = vrot.lane.b32.xlu0 %v1455_v50, %s1079_s25  ;;  %742 = vrot.lane.b32.xlu1 %v1465_v52, %s1077_s21 }
 0x1cc   :  { %748 = vrot.lane.b32.xlu0 %v1455_v50, %s1080_s5  ;;  %758 = vrot.lane.b32.xlu1 %v1465_v52, %s1078_s24 }
 0x1d0   :  { %764 = vrot.lane.b32.xlu0 %v1455_v50, %s1081_s26  ;;  %734 = vrot.lane.b32.xlu1 %v1465_v52, %s1079_s25 }
 0x1d4   :  { %780 = vrot.lane.b32.xlu0 %v1455_v50, %s1082_s27  ;;  %750 = vrot.lane.b32.xlu1 %v1465_v52, %s1080_s5 }
 0x1d8   :  { %772 = vrot.lane.b32.xlu0 %v1455_v50, %s1083_s28  ;;  %766 = vrot.lane.b32.xlu1 %v1465_v52, %s1081_s26 }
 0x1dc   :  { %788 = vrot.lane.b32.xlu0 %v1455_v50, %s1085_s29  ;;  %782 = vrot.lane.b32.xlu1 %v1465_v52, %s1082_s27 }
 0x1e0   :  { %164 = vperm.xlu0 %997, %v161_v55   ;;  %774 = vrot.lane.b32.xlu1 %v1465_v52, %s1083_s28 }
 0x1e4   :  { %790 = vrot.lane.b32.xlu1 %v1465_v52, %s1085_s29 }
 0x216   :  { %v387_v56 = vpop.permute.xlu0 %386  ;;  %v371_v57 = vpop.permute.xlu1 %370 }
 0x21a   :  { %v363_v58 = vpop.permute.xlu0 %362  ;;  %v373_v59 = vpop.permute.xlu1 %372 }
 0x21b   :  { %v374_v62 = vsel %vm186_vm1, %v371_v57, %v373_v59  ;;  %v375_v63 = vsel %vm186_vm1, %v373_v59, %v371_v57 }
 0x21c   :  { %v376_v15 = vmul.f32 %v375_v63, %v1251_v23  ;;  %v377_v16 = vmul.f32 %v374_v62, %v1254_v24 }
 0x21e   :  { %v379_v60 = vpop.permute.xlu0 %378  ;;  %v389_v61 = vpop.permute.xlu1 %388  ;;  %v429_v33 = vrot.slane %v376_v15, 4  ;;  %v430_v34 = vrot.slane %v377_v16, 4 }
 0x21f   :  { %v390_v5 = vsel %vm204_vm0, %v387_v56, %v389_v61  ;;  %v391_v10 = vsel %vm204_vm0, %v389_v61, %v387_v56 }
 0x220   :  { %v392_v21 = vmul.f32 %v391_v10, %v1240_v18  ;;  %v393_v22 = vmul.f32 %v390_v5, %v1243_v19 }
 0x222   :  { %v395_v11 = vpop.permute.xlu0 %394  ;;  %v365_v14 = vpop.permute.xlu1 %364  ;;  %v435_v39 = vrot.slane %v392_v21, 4  ;;  %v436_v13 = vrot.slane %v393_v22, 4 }
 0x223   :  { %v366_v17 = vsel %vm177_vm2, %v363_v58, %v365_v14  ;;  %v367_v20 = vsel %vm177_vm2, %v365_v14, %v363_v58 }
 0x224   :  { %v368_v29 = vmul.f32 %v367_v20, %v1258_v27  ;;  %v369_v30 = vmul.f32 %v366_v17, %v1261_v28 }
 0x226   :  { %v411_v31 = vpop.permute.xlu0 %410  ;;  %v381_v32 = vpop.permute.xlu1 %380  ;;  %v452_v45 = vsel %vm270_vm4, %v369_v30, %v430_v34  ;;  %v451_v48 = vsel %vm270_vm4, %v368_v29, %v429_v33 }
 0x227   :  { %v382_v35 = vsel %vm195_vm3, %v379_v60, %v381_v32  ;;  %v383_v38 = vsel %vm195_vm3, %v381_v32, %v379_v60 }
 0x228   :  { %v384_v40 = vmul.f32 %v383_v38, %v1273_v36  ;;  %v385_v41 = vmul.f32 %v382_v35, %v1276_v37 }
 0x22a   :  { %v403_v42 = vpop.permute.xlu0 %402  ;;  %v397_v43 = vpop.permute.xlu1 %396  ;;  %v454_v47 = vsel %vm270_vm4, %v385_v41, %v436_v13  ;;  %v453_v49 = vsel %vm270_vm4, %v384_v40, %v435_v39 }
 0x22b   :  { %v398_v51 = vsel %vm213_vm5, %v395_v11, %v397_v43  ;;  %v399_v55 = vsel %vm213_vm5, %v397_v43, %v395_v11  ;;  %v957_v56 = vpack.c.bf16 %v454_v47, %v452_v45  ;;  %v959_v57 = vpack.c.bf16 %v453_v49, %v451_v48  ;;  %v426_v45 = vld [vmem:[%s1648_s2] sm:$0xf] }
 0x22c   :  { %v400_v58 = vmul.f32 %v398_v51, %v1292_v53  ;;  %v401_v59 = vmul.f32 %v399_v55, %v1295_v54 }
 0x22d   :  { %958 = vmatprep.subr.bf16.mxu1 %v957_v56 }
 0x22e   :  { %v419_v60 = vpop.permute.xlu0 %418  ;;  %960 = vmatpush1.bf16.msra.mxu1 %v959_v57  ;;  %v413_v61 = vpop.permute.xlu1 %412  ;;  %v441_v11 = vrot.slane %v400_v58, 4  ;;  %v442_v14 = vrot.slane %v401_v59, 4 }
 0x22f   :  { %v414_v62 = vsel %vm231_vm6, %v411_v31, %v413_v61  ;;  %v415_v63 = vsel %vm231_vm6, %v413_v61, %v411_v31 }
 0x230   :  { %v416_v5 = vmul.f32 %v414_v62, %v1307_v7  ;;  %v417_v10 = vmul.f32 %v415_v63, %v1310_v8  ;;  %v456_v33 = vsel %vm270_vm4, %v1429_v46, %v442_v14  ;;  %v455_v35 = vsel %vm270_vm4, %v1423_v44, %v441_v11 }
 0x232   :  { %v741_v15 = vpop.permute.xlu0 %740  ;;  %v405_v16 = vpop.permute.xlu1 %404  ;;  %v447_v21 = vrot.slane %v416_v5, 4  ;;  %v448_v22 = vrot.slane %v417_v10, 4 }
 0x233   :  { %v406_v17 = vsel %vm222_vm7, %v403_v42, %v405_v16  ;;  %v407_v20 = vsel %vm222_vm7, %v405_v16, %v403_v42 }
 0x234   :  { %v408_v29 = vmul.f32 %v406_v17, %v1322_v25  ;;  %v409_v30 = vmul.f32 %v407_v20, %v1325_v26 }
 0x236   :  { %v757_v31 = vpop.permute.xlu0 %756  ;;  %v421_v32 = vpop.permute.xlu1 %420  ;;  %v458_v34 = vsel %vm270_vm4, %v409_v30, %v448_v22  ;;  %v457_v38 = vsel %vm270_vm4, %v408_v29, %v447_v21 }
 0x237   :  { %v423_v39 = vsel %vm240_vm8, %v421_v32, %v419_v60  ;;  %v961_v13 = vpack.c.bf16 %v458_v34, %v456_v33  ;;  %v963_v40 = vpack.c.bf16 %v457_v38, %v455_v35  ;;  %v422_v42 = vsel %vm240_vm8, %v419_v60, %v421_v32 }
 0x238   :  { %v425_v41 = vmul.f32 %v423_v39, %v1366_v12  ;;  %v424_v44 = vmul.f32 %v422_v42, %v1353_v6 }
 0x239   :  { %962 = vmatprep.subr.bf16.mxu1 %v961_v13 }
 0x23a   :  { %v733_v43 = vpop.permute.xlu0 %732  ;;  %964 = vmatpush1.bf16.msra.mxu1 %v963_v40  ;;  %v743_v46 = vpop.permute.xlu1 %742 }
 0x23b   :  { %940 = vmatprep.subr.msk.mxu1 %vm270_vm4, %v425_v41  ;;  %v744_v49 = vsel %vm186_vm1, %v741_v15, %v743_v46  ;;  %v745_v51 = vsel %vm186_vm1, %v743_v46, %v741_v15 }
 0x23c   :  { %v746_v58 = vmul.f32 %v745_v51, %v1251_v23  ;;  %v747_v59 = vmul.f32 %v744_v49, %v1254_v24 }
 0x23e   :  { %v749_v47 = vpop.permute.xlu0 %748  ;;  %941 = vmatpush1.msk.msra.mxu1 %vm270_vm4, %v424_v44  ;;  %v759_v48 = vpop.permute.xlu1 %758  ;;  %v799_v14 = vrot.slane %v746_v58, 4  ;;  %v800_v23 = vrot.slane %v747_v59, 4 }
 0x23f   :  { %942 = vmatmul.mubr.msk.f32.vlgmr.msra.gmra.mrb[0].mxu1 %vm279_vm9, %v426_v45  ;;  %v760_v55 = vsel %vm204_vm0, %v757_v31, %v759_v48  ;;  %v761_v56 = vsel %vm204_vm0, %v759_v48, %v757_v31 }
 0x240   :  { %902 = vmatprep.mubr.f32.mxu1 %v1084_v4  ;;  %v762_v62 = vmul.f32 %v761_v56, %v1240_v18  ;;  %v763_v4 = vmul.f32 %v760_v55, %v1243_v19 }
 0x242   :  { %v735_v57 = vpop.permute.xlu1 %734  ;;  %v765_v63 = vpop.permute.xlu0 %764  ;;  %v805_v16 = vrot.slane %v762_v62, 4  ;;  %v806_v17 = vrot.slane %v763_v4, 4 }
 0x243   :  { %v736_v60 = vsel %vm177_vm2, %v733_v43, %v735_v57  ;;  %v737_v61 = vsel %vm177_vm2, %v735_v57, %v733_v43 }
 0x244   :  { %v738_v5 = vmul.f32 %v737_v61, %v1258_v27  ;;  %v739_v10 = vmul.f32 %v736_v60, %v1261_v28 }
 0x246   :  { %v751_v11 = vpop.permute.xlu1 %750  ;;  %v821_v20 = vsel %vm270_vm4, %v738_v5, %v799_v14  ;;  %v781_v27 = vpop.permute.xlu0 %780  ;;  %v822_v22 = vsel %vm270_vm4, %v739_v10, %v800_v23 }
 0x247   :  { %v752_v24 = vsel %vm195_vm3, %v749_v47, %v751_v11  ;;  %v753_v15 = vsel %vm195_vm3, %v751_v11, %v749_v47 }
 0x248   :  { %v754_v18 = vmul.f32 %v753_v15, %v1273_v36  ;;  %v755_v19 = vmul.f32 %v752_v24, %v1276_v37 }
 0x24a   :  { %v823_v28 = vsel %vm270_vm4, %v754_v18, %v805_v16  ;;  %v767_v21 = vpop.permute.xlu1 %766  ;;  %v824_v29 = vsel %vm270_vm4, %v755_v19, %v806_v17  ;;  %v773_v39 = vpop.permute.xlu0 %772 }
 0x24b   :  { %v768_v30 = vsel %vm213_vm5, %v765_v63, %v767_v21  ;;  %v769_v31 = vsel %vm213_vm5, %v767_v21, %v765_v63  ;;  %v973_v32 = vpack.c.bf16 %v824_v29, %v822_v22  ;;  %v975_v36 = vpack.c.bf16 %v823_v28, %v821_v20 }
 0x24c   :  { %v770_v37 = vmul.f32 %v768_v30, %v1292_v53  ;;  %v771_v33 = vmul.f32 %v769_v31, %v1295_v54 }
 0x24d   :  { %974 = vmatprep.subr.bf16.mxu1 %v973_v32 }
 0x24e   :  { %976 = vmatpush1.bf16.msra.mxu1 %v975_v36  ;;  %v783_v34 = vpop.permute.xlu1 %782  ;;  %v811_v41 = vrot.slane %v770_v37, 4  ;;  %v812_v42 = vrot.slane %v771_v33, 4  ;;  %v789_v48 = vpop.permute.xlu0 %788 }
 0x24f   :  { %v784_v35 = vsel %vm231_vm6, %v781_v27, %v783_v34  ;;  %v785_v38 = vsel %vm231_vm6, %v783_v34, %v781_v27 }
 0x250   :  { %v786_v13 = vmul.f32 %v784_v35, %v1307_v7  ;;  %v787_v40 = vmul.f32 %v785_v38, %v1310_v8  ;;  %v825_v7 = vsel %vm270_vm4, %v1455_v50, %v811_v41  ;;  %v826_v51 = vsel %vm270_vm4, %v1465_v52, %v812_v42  ;;  %v796_v52 = vld [vmem:[%s1648_s2] sm:$0xf]  ;;  %s1087_s2 = smov [#allocation7]  }
 0x251   :  { %s924_s17 = sshll.u32 %s1087_s2, 4  ;;  %s925_s17 = int_to_ptr.vmem [resolvable:$true] %s924_s17 }
 0x252   :  { %v775_v43 = vpop.permute.xlu1 %774  ;;  %v817_v46 = vrot.slane %v786_v13, 4  ;;  %v818_v44 = vrot.slane %v787_v40, 4  ;;  %s1044_s18 = scalar_lea.vmem %s925_s17, 256  ;;  %p1049_p3 = scmp.lt.s32.totalorder %s925_s17, %s925_s17 }
 0x253   :  { %v776_v53 = vsel %vm222_vm7, %v773_v39, %v775_v43  ;;  %v777_v54 = vsel %vm222_vm7, %v775_v43, %v773_v39  ;;  %p1045_p2 = scmp.ne.s32.totalorder %s925_s17, %s1044_s18  ;;  %p1050_p4 = scmp.lt.s32.totalorder %s1044_s18, %s1044_s18 }
 0x254   :  { %v778_v45 = vmul.f32 %v776_v53, %v1322_v25  ;;  %v779_v47 = vmul.f32 %v777_v54, %v1325_v26 }
 0x255   :  { %p1051_p5 = por %p1050_p4, %p1049_p3 }
 0x256   :  { %v827_v8 = vsel %vm270_vm4, %v778_v45, %v817_v46  ;;  %v791_v49 = vpop.permute.xlu1 %790  ;;  %v828_v55 = vsel %vm270_vm4, %v779_v47, %v818_v44 }
 0x257   :  { %v793_v56 = vsel %vm240_vm8, %v791_v49, %v789_v48  ;;  %v977_v57 = vpack.c.bf16 %v828_v55, %v826_v51  ;;  %v979_v58 = vpack.c.bf16 %v827_v8, %v825_v7  ;;  %v792_v26 = vsel %vm240_vm8, %v789_v48, %v791_v49  ;;  %p1052_p6 = pnand %p1051_p5, %p1045_p2 }
 0x258   :  { %v795_v25 = vmul.f32 %v793_v56, %v1366_v12  ;;  %v794_v50 = vmul.f32 %v792_v26, %v1353_v6 }
 0x259   :  { %978 = vmatprep.subr.bf16.mxu1 %v977_v57 }
 0x25a   :  { %980 = vmatpush1.bf16.msra.mxu1 %v979_v58 }
 0x25b   :  { %946 = vmatprep.subr.msk.mxu1 %vm270_vm4, %v795_v25 }
 0x25e   :  { %947 = vmatpush1.msk.msra.mxu1 %vm270_vm4, %v794_v50 }
 0x25f   :  { %948 = vmatmul.mubr.msk.f32.vlgmr.msra.gmra.mrb[2].mxu1 %vm279_vm9, %v796_v52  ;;  %v165_v59 = vpop.permute.xlu0 %164 }
 0x312   :  { %v534_v60 = vpop.f32.mrb[0].mxu1 }
 0x313   :  { %v535_v12 = vadd.f32 %v534_v60, %v165_v59  ;;  %v536_v61 = vpop.f32.mrb[1].mxu1 }
 0x314   :  { %v537_v9 = vadd.f32 %v536_v61, %v165_v59 }
 0x315   :  { %v539_v62 = vadd.f32 %v535_v12, %v1151_v0 }
 0x316   :  { %v540_v4 = vadd.f32 %v537_v9, %v1159_v1 }
 0x317   :  { %v541_v63 = vmax.f32 %v539_v62, 0.0 }
 0x318   :  { %v542_v5 = vmax.f32 %v540_v4, 0.0 }
 0x31a   :  { %v545_v6 = vcombine.low %v541_v63, %v542_v5 }
 0x31c   :  { %547 = vst [vmem:[#allocation7] sm:$0xff] %v545_v6 }
 0x332   :  { %v904_v10 = vpop.f32.mrb[2].mxu1 }
 0x333   :  { %v905_v11 = vadd.f32 %v904_v10, %v165_v59  ;;  %v906_v14 = vpop.f32.mrb[3].mxu1 }
 0x334   :  { %v907_v23 = vadd.f32 %v906_v14, %v165_v59 }
 0x335   :  { %v909_v24 = vadd.f32 %v905_v11, %v1181_v2 }
 0x336   :  { %v910_v15 = vadd.f32 %v907_v23, %v1189_v3 }
 0x337   :  { %v911_v16 = vmax.f32 %v909_v24, 0.0 }
 0x338   :  { %v912_v17 = vmax.f32 %v910_v15, 0.0 }
 0x33a   :  { %v915_v18 = vcombine.low %v911_v16, %v912_v17 }
 0x33c   :  { %918 = vst [vmem:[#allocation7 + $0x8] sm:$0xff] %v915_v18 }
 0x33d   :  { %1055 = shalt.err (!%p1052_p6)
}
 0x33e   :  { %s1056_s0 = scalar_lea.hbm %s1652_s6, 256 }
 0x33f   :  { %p1057_p7 = scmp.ne.s32.totalorder %s1652_s6, %s1056_s0  ;;  %p1060_p8 = scmp.lt.u32.totalorder %s1056_s0, %s1652_s6 }
 0x341   :  { %p1062_p9 = pnand %p1060_p8, %p1057_p7 }
 0x343   :  { %1065 = shalt.err (!%p1062_p9)
}
 0x344   :  { %930 = dma.vmem_to_hbm [thread:$0]  %s925_s17, 256, %s1652_s6, [#allocation4], %s1073_s7, %s1073_s7, %s1074_s8  }
 0x345   :  { %1070 = dma.done.wait [#allocation4], 256  }
 0x346   :  { %1071 = vsyncadd [#allocation4], 4294967040 }
 0x347   :  { %934 = vsyncpa [#allocation3], 1 }
 0x348   :  { %935 = vsyncpa [#allocation6], 1 }
 0x349   :  { %936 = vsyncpa [#allocation4], 1 }

</bundles_post_ra>
